<compile_context>
chip_gen: v5e
topology: v5e:2x2
jax: 0.10.0
libtpu: 0.0.40
codegen_flags: <defaults>
</compile_context>

<pallas_src>
import functools

import jax
import jax.numpy as jnp
from jax.experimental import pallas as pl
from jax.experimental.pallas import tpu as pltpu

INPUT_SIZE = 2
HIDDEN_SIZE = 128
OUTPUT_SIZE = 1


def _round_up(n, m):
    return ((n + m - 1) // m) * m


def _discriminator_kernel(x_ref, w1_ref, b1_ref, w2_ref, b2_ref,
                          w3_ref, b3_ref, o_ref, *, approx_recip):
    """One batch tile, batch-on-lanes: (INPUT_SIZE, tb) -> (1, tb).

    fc1 (K=2)   : VPU broadcast-FMAs (an MXU matmul would waste >98% of its
                  contraction width and still pay full push/pop latency).
    fc2 (128^2) : MXU matmul (bf16 or f32 inputs), f32 accumulation.
    fc3 (N=1)   : VPU multiply + sublane reduction; logits land lane-dense.
    """
    x = x_ref[...].astype(jnp.float32)              # (INPUT_SIZE, tb)
    w1 = w1_ref[...].astype(jnp.float32)            # (HIDDEN, INPUT_SIZE)

    # ---- fc1 + relu (VPU) ----
    h1 = b1_ref[...].astype(jnp.float32)            # (HIDDEN, 1) broadcasts
    for f in range(INPUT_SIZE):                     # static unroll, INPUT_SIZE=2
        h1 = h1 + w1[:, f:f + 1] * x[f:f + 1, :]
    h1 = jnp.maximum(h1, 0.0)                       # (HIDDEN, tb), f32

    # ---- fc2 + relu (MXU, f32 accumulate) ----
    # W2 is in PyTorch (out, in) layout, so column-form output is W2 @ H1.
    h2 = jnp.dot(w2_ref[...], h1.astype(w2_ref.dtype),
                 preferred_element_type=jnp.float32)
    h2 = jnp.maximum(h2 + b2_ref[...].astype(jnp.float32), 0.0)   # (HIDDEN, tb)

    # ---- fc3 + sigmoid (VPU mul + sublane reduce; lane-dense epilogue) ----
    w3 = w3_ref[...].astype(jnp.float32)            # (HIDDEN, 1)
    logits = jnp.sum(h2 * w3, axis=0, keepdims=True)  # (1, tb)
    logits = logits + b3_ref[...].astype(jnp.float32)

    e = jnp.exp(-logits)                            # EUP
    if approx_recip:
        out = pl.reciprocal(1.0 + e, approx=True)   # EUP reciprocal slot
    else:
        out = 1.0 / (1.0 + e)                       # exact path
    o_ref[...] = out.astype(o_ref.dtype)


@functools.partial(jax.jit, static_argnames=("tb", "use_bf16_fc2"))
def discriminator_forward(x, params, *, tb=4096, use_bf16_fc2=True):
    """x: [B, INPUT_SIZE] float32 -> [B, OUTPUT_SIZE] float32.

    params = (w1 [hid, in], b1 [hid, 1],
              w2 [hid, hid] (PyTorch (out, in) layout), b2 [hid, 1],
              w3 [hid, 1]  (column layout of fc3 weight), b3 [1, 1])
    """
    w1, b1, w2, b2, w3, b3 = params
    B, F = x.shape
    assert F == INPUT_SIZE

    # Batch lives on the lane axis, so tiles must be multiples of 128.
    # Cap tb so the (parallel) grid has >= 2 steps when the batch allows it:
    # keeps both v7x TensorCores busy; harmless on single-TC v5e/v6e.
    B128 = _round_up(B, 128)
    half = max(128, (B128 // 2) // 128 * 128)
    tb = max(128, min(int(tb), half))
    tb = (tb // 128) * 128
    B_pad = _round_up(B, tb)

    # Transpose to batch-on-lanes and pad the batch (padded rows are valid
    # inputs and get sliced off below).
    xt = jnp.pad(x.T, ((0, 0), (0, B_pad - B)))     # (INPUT_SIZE, B_pad)

    if use_bf16_fc2:
        # bf16 MXU inputs run at full rate on v5e/v6e/v7x; accumulation is f32.
        w2 = w2.astype(jnp.bfloat16)

    grid = (B_pad // tb,)
    # Constant index maps: weight blocks are fetched once and stay resident in
    # VMEM across the (parallel) batch grid -- no per-step re-DMA.
    full = lambda shape: pl.BlockSpec(shape, lambda i: (0, 0))

    flops = 2 * B_pad * (INPUT_SIZE * HIDDEN_SIZE
                         + HIDDEN_SIZE * HIDDEN_SIZE
                         + HIDDEN_SIZE * OUTPUT_SIZE)
    bytes_accessed = (xt.size * 4 + B_pad * 4
                      + (w1.size + b1.size + b2.size + w3.size + b3.size) * 4
                      + w2.size * (2 if use_bf16_fc2 else 4))
    cost = pl.CostEstimate(flops=flops, transcendentals=B_pad,
                           bytes_accessed=bytes_accessed)

    kernel = functools.partial(_discriminator_kernel,
                               approx_recip=use_bf16_fc2)

    out = pl.pallas_call(
        kernel,
        out_shape=jax.ShapeDtypeStruct((1, B_pad), jnp.float32),
        grid_spec=pltpu.PrefetchScalarGridSpec(
            num_scalar_prefetch=0,
            grid=grid,
            in_specs=[
                pl.BlockSpec((INPUT_SIZE, tb), lambda i: (0, i)),   # x tile
                full((HIDDEN_SIZE, INPUT_SIZE)),                    # w1
                full((HIDDEN_SIZE, 1)),                             # b1
                full((HIDDEN_SIZE, HIDDEN_SIZE)),                   # w2
                full((HIDDEN_SIZE, 1)),                             # b2
                full((HIDDEN_SIZE, 1)),                             # w3 (col)
                full((1, 1)),                                       # b3
            ],
            out_specs=pl.BlockSpec((1, tb), lambda i: (0, i)),      # lane-dense
        ),
        compiler_params=pltpu.CompilerParams(
            dimension_semantics=("parallel",),
            vmem_limit_bytes=32 * 1024 * 1024),
        cost_estimate=cost,
    )(xt, w1, b1, w2, b2, w3, b3)

    return out[0, :B].reshape(B, OUTPUT_SIZE)


def init_params(key):
    """Deterministic init matching PyTorch nn.Linear default:
    U(-1/sqrt(fan_in), 1/sqrt(fan_in)) for both weight and bias.
    Weights are stored in PyTorch (out, in) layout; biases as columns."""
    def linear(key, fan_in, fan_out):
        kw, kb = jax.random.split(key)
        bound = 1.0 / jnp.sqrt(jnp.float32(fan_in))
        w = jax.random.uniform(kw, (fan_out, fan_in), jnp.float32, -bound, bound)
        b = jax.random.uniform(kb, (fan_out, 1), jnp.float32, -bound, bound)
        return w, b

    k1, k2, k3 = jax.random.split(key, 3)
    w1, b1 = linear(k1, INPUT_SIZE, HIDDEN_SIZE)       # (128, 2), (128, 1)
    w2, b2 = linear(k2, HIDDEN_SIZE, HIDDEN_SIZE)      # (128, 128), (128, 1)
    w3r, b3r = linear(k3, HIDDEN_SIZE, OUTPUT_SIZE)    # (1, 128), (1, 1)
    w3 = w3r.T                                         # (128, 1) column
    b3 = b3r                                           # (1, 1)
    return (w1, b1, w2, b2, w3, b3)


def reference_forward(x, params):
    """Pure-JAX reference with exact PyTorch Linear semantics."""
    w1, b1, w2, b2, w3, b3 = params
    h = jnp.maximum(x @ w1.T + b1.T, 0.0)
    h = jnp.maximum(h @ w2.T + b2.T, 0.0)
    logits = h @ w3 + b3
    return jax.nn.sigmoid(logits)


if __name__ == "__main__":
    key = jax.random.PRNGKey(0)
    kx, knoise, kp = jax.random.split(key, 3)

    B = 8
    x = jax.random.normal(kx, (B, INPUT_SIZE), jnp.float32)
    # mirrors the module-level `x = x + 0.1 * np.random.randn(*x.shape)`
    x = x + 0.1 * jax.random.normal(knoise, x.shape, jnp.float32)
    params = init_params(kp)

    ref = reference_forward(x, params)

    # Full-f32 path (exact reciprocal): tight tolerance.
    out_f32 = jax.block_until_ready(
        discriminator_forward(x, params, use_bf16_fc2=False))
    assert out_f32.shape == (B, OUTPUT_SIZE)
    assert jnp.allclose(out_f32, ref, atol=1e-5, rtol=1e-5), (
        f"f32 mismatch: max err {jnp.max(jnp.abs(out_f32 - ref))}")

    # Default fast path (bf16 fc2 + approx EUP reciprocal): looser tolerance.
    out_fast = jax.block_until_ready(discriminator_forward(x, params))
    assert out_fast.shape == (B, OUTPUT_SIZE)
    assert jnp.allclose(out_fast, ref, atol=3e-2, rtol=0.0), (
        f"bf16 mismatch: max err {jnp.max(jnp.abs(out_fast - ref))}")

    # Exercise batch padding + a multi-step parallel grid (grid >= 2).
    B2 = 300
    x2 = jax.random.normal(jax.random.PRNGKey(1), (B2, INPUT_SIZE), jnp.float32)
    out2 = jax.block_until_ready(
        discriminator_forward(x2, params, tb=128, use_bf16_fc2=False))
    ref2 = reference_forward(x2, params)
    assert out2.shape == (B2, OUTPUT_SIZE)
    assert jnp.allclose(out2, ref2, atol=1e-5, rtol=1e-5), (
        f"padded-grid mismatch: max err {jnp.max(jnp.abs(out2 - ref2))}")

    print("KERNEL_OK")
</pallas_src>

<mosaic_0001>
module attributes {stable_mosaic.version = 11 : i64} {
  func.func @_discriminator_kernel(%arg0: i32, %arg1: memref<2x128xf32, #tpu.memory_space<vmem>>, %arg2: memref<128x2xf32, #tpu.memory_space<vmem>>, %arg3: memref<128x1xf32, #tpu.memory_space<vmem>>, %arg4: memref<128x128xf32, #tpu.memory_space<vmem>>, %arg5: memref<128x1xf32, #tpu.memory_space<vmem>>, %arg6: memref<128x1xf32, #tpu.memory_space<vmem>>, %arg7: memref<1x1xf32, #tpu.memory_space<vmem>>, %arg8: memref<1x128xf32, #tpu.memory_space<vmem>>) attributes {dimension_semantics = [#tpu.dimension_semantics<parallel>], iteration_bounds = array<i64: 1>, scalar_prefetch = 0 : i64, scratch_operands = 0 : i64, tpu.core_type = #tpu.core_type<tc>, window_params = [{transform_indices = @transform_0, window_bounds = array<i64: 2, 128>}, {pipeline_mode = #tpu.pipeline_mode<synchronous>, transform_indices = @transform_1, window_bounds = array<i64: 128, 2>}, {pipeline_mode = #tpu.pipeline_mode<synchronous>, transform_indices = @transform_2, window_bounds = array<i64: 128, 1>}, {pipeline_mode = #tpu.pipeline_mode<synchronous>, transform_indices = @transform_3, window_bounds = array<i64: 128, 128>}, {pipeline_mode = #tpu.pipeline_mode<synchronous>, transform_indices = @transform_4, window_bounds = array<i64: 128, 1>}, {pipeline_mode = #tpu.pipeline_mode<synchronous>, transform_indices = @transform_5, window_bounds = array<i64: 128, 1>}, {pipeline_mode = #tpu.pipeline_mode<synchronous>, transform_indices = @transform_6, window_bounds = array<i64: 1, 1>}, {transform_indices = @transform_7, window_bounds = array<i64: 1, 128>}]} {
    %c0 = arith.constant 0 : index
    %c0_0 = arith.constant 0 : index
    %0 = vector.load %arg1[%c0, %c0_0] : memref<2x128xf32, #tpu.memory_space<vmem>>, vector<2x128xf32>
    %c0_1 = arith.constant 0 : index
    %c0_2 = arith.constant 0 : index
    %1 = vector.load %arg2[%c0_1, %c0_2] : memref<128x2xf32, #tpu.memory_space<vmem>>, vector<128x2xf32>
    %c0_3 = arith.constant 0 : index
    %c0_4 = arith.constant 0 : index
    %2 = vector.load %arg3[%c0_3, %c0_4] : memref<128x1xf32, #tpu.memory_space<vmem>>, vector<128x1xf32>
    %3 = vector.extract_strided_slice %1 {offsets = [0, 0], sizes = [128, 1], strides = [1, 1]} : vector<128x2xf32> to vector<128x1xf32>
    %4 = vector.extract_strided_slice %0 {offsets = [0, 0], sizes = [1, 128], strides = [1, 1]} : vector<2x128xf32> to vector<1x128xf32>
    %5 = vector.broadcast %3 : vector<128x1xf32> to vector<128x128xf32>
    %6 = vector.broadcast %4 : vector<1x128xf32> to vector<128x128xf32>
    %7 = arith.mulf %5, %6 : vector<128x128xf32>
    %8 = vector.broadcast %2 : vector<128x1xf32> to vector<128x128xf32>
    %9 = arith.addf %8, %7 : vector<128x128xf32>
    %10 = vector.extract_strided_slice %1 {offsets = [0, 1], sizes = [128, 1], strides = [1, 1]} : vector<128x2xf32> to vector<128x1xf32>
    %11 = vector.extract_strided_slice %0 {offsets = [1, 0], sizes = [1, 128], strides = [1, 1]} : vector<2x128xf32> to vector<1x128xf32>
    %12 = vector.broadcast %10 : vector<128x1xf32> to vector<128x128xf32>
    %13 = vector.broadcast %11 : vector<1x128xf32> to vector<128x128xf32>
    %14 = arith.mulf %12, %13 : vector<128x128xf32>
    %15 = arith.addf %9, %14 : vector<128x128xf32>
    %cst = arith.constant 0.000000e+00 : f32
    %16 = vector.broadcast %cst : f32 to vector<128x128xf32>
    %17 = arith.maximumf %15, %16 : vector<128x128xf32>
    %c0_5 = arith.constant 0 : index
    %c0_6 = arith.constant 0 : index
    %18 = vector.load %arg4[%c0_5, %c0_6] : memref<128x128xf32, #tpu.memory_space<vmem>>, vector<128x128xf32>
    %cst_7 = arith.constant dense<0.000000e+00> : vector<128x128xf32>
    %19 = tpu.matmul %18, %17, %cst_7 {dimension_numbers = #tpu.dot_dimension_numbers<[1], [0], [0], [1], [0, 0, 1, 1], [], []>} : vector<128x128xf32>, vector<128x128xf32>, vector<128x128xf32> -> vector<128x128xf32>
    %c0_8 = arith.constant 0 : index
    %c0_9 = arith.constant 0 : index
    %20 = vector.load %arg5[%c0_8, %c0_9] : memref<128x1xf32, #tpu.memory_space<vmem>>, vector<128x1xf32>
    %21 = vector.broadcast %20 : vector<128x1xf32> to vector<128x128xf32>
    %22 = arith.addf %19, %21 : vector<128x128xf32>
    %cst_10 = arith.constant 0.000000e+00 : f32
    %23 = vector.broadcast %cst_10 : f32 to vector<128x128xf32>
    %24 = arith.maximumf %22, %23 : vector<128x128xf32>
    %c0_11 = arith.constant 0 : index
    %c0_12 = arith.constant 0 : index
    %25 = vector.load %arg6[%c0_11, %c0_12] : memref<128x1xf32, #tpu.memory_space<vmem>>, vector<128x1xf32>
    %26 = vector.broadcast %25 : vector<128x1xf32> to vector<128x128xf32>
    %27 = arith.mulf %24, %26 : vector<128x128xf32>
    %cst_13 = arith.constant dense<0.000000e+00> : vector<128xf32>
    %28 = vector.multi_reduction <add>, %27, %cst_13 [0] : vector<128x128xf32> to vector<128xf32>
    %29 = vector.shape_cast %28 : vector<128xf32> to vector<1x128xf32>
    %c0_14 = arith.constant 0 : index
    %c0_15 = arith.constant 0 : index
    %30 = vector.load %arg7[%c0_14, %c0_15] : memref<1x1xf32, #tpu.memory_space<vmem>>, vector<1x1xf32>
    %31 = vector.broadcast %30 : vector<1x1xf32> to vector<1x128xf32>
    %32 = arith.addf %29, %31 : vector<1x128xf32>
    %cst_16 = arith.constant 0.000000e+00 : f32
    %33 = vector.broadcast %cst_16 : f32 to vector<1x128xf32>
    %34 = arith.subf %33, %32 : vector<1x128xf32>
    %35 = math.exp %34 : vector<1x128xf32>
    %cst_17 = arith.constant 1.000000e+00 : f32
    %36 = vector.broadcast %cst_17 : f32 to vector<1x128xf32>
    %37 = arith.addf %36, %35 : vector<1x128xf32>
    %cst_18 = arith.constant 1.000000e+00 : f32
    %38 = vector.broadcast %cst_18 : f32 to vector<1x128xf32>
    %39 = arith.divf %38, %37 : vector<1x128xf32>
    %c0_19 = arith.constant 0 : index
    %c0_20 = arith.constant 0 : index
    %40 = vector.load %arg8[%c0_19, %c0_20] : memref<1x128xf32, #tpu.memory_space<vmem>>, vector<1x128xf32>
    tpu.vector_store %arg8[%c0_19, %c0_20], %39 {strides = array<i32>} : memref<1x128xf32, #tpu.memory_space<vmem>>, vector<1x128xf32>,
    return
  }
  func.func @transform_0(%arg0: i32) -> (i32, i32) {
    %c0_i32 = arith.constant 0 : i32
    %c0_i32_0 = arith.constant 0 : i32
    return %c0_i32, %arg0 : i32, i32
  }
  func.func @transform_1(%arg0: i32) -> (i32, i32) {
    %c0_i32 = arith.constant 0 : i32
    %c0_i32_0 = arith.constant 0 : i32
    %c0_i32_1 = arith.constant 0 : i32
    return %c0_i32, %c0_i32_0 : i32, i32
  }
  func.func @transform_2(%arg0: i32) -> (i32, i32) {
    %c0_i32 = arith.constant 0 : i32
    %c0_i32_0 = arith.constant 0 : i32
    %c0_i32_1 = arith.constant 0 : i32
    return %c0_i32, %c0_i32_0 : i32, i32
  }
  func.func @transform_3(%arg0: i32) -> (i32, i32) {
    %c0_i32 = arith.constant 0 : i32
    %c0_i32_0 = arith.constant 0 : i32
    %c0_i32_1 = arith.constant 0 : i32
    return %c0_i32, %c0_i32_0 : i32, i32
  }
  func.func @transform_4(%arg0: i32) -> (i32, i32) {
    %c0_i32 = arith.constant 0 : i32
    %c0_i32_0 = arith.constant 0 : i32
    %c0_i32_1 = arith.constant 0 : i32
    return %c0_i32, %c0_i32_0 : i32, i32
  }
  func.func @transform_5(%arg0: i32) -> (i32, i32) {
    %c0_i32 = arith.constant 0 : i32
    %c0_i32_0 = arith.constant 0 : i32
    %c0_i32_1 = arith.constant 0 : i32
    return %c0_i32, %c0_i32_0 : i32, i32
  }
  func.func @transform_6(%arg0: i32) -> (i32, i32) {
    %c0_i32 = arith.constant 0 : i32
    %c0_i32_0 = arith.constant 0 : i32
    %c0_i32_1 = arith.constant 0 : i32
    return %c0_i32, %c0_i32_0 : i32, i32
  }
  func.func @transform_7(%arg0: i32) -> (i32, i32) {
    %c0_i32 = arith.constant 0 : i32
    %c0_i32_0 = arith.constant 0 : i32
    return %c0_i32, %arg0 : i32, i32
  }
}

</mosaic_0001>

<bundles_post_ra>
// kernel: discriminator_forward.1
= control target key start
LH: loop header
LB: loop body
LE: loop exit
PB: predicated region body
PF: predicated region fallthrough
CT: control target
= control target key end

     0   :  { %v788_v0 = vmov 0   ;;  %v789_v33 = vmov 1   ;;  %s1233_s1 = inlined_call_operand.vmem [shape: f32[128,2], index: 1, kind: input, shape index: {}]   ;;  %s1234_s2 = inlined_call_operand.vmem [shape: f32[128,1], index: 2, kind: input, shape index: {}]   ;;  %s1235_s0 = inlined_call_operand.vmem [shape: f32[2,128], index: 0, kind: input, shape index: {}]   ;;  %s1236_s4 = inlined_call_operand.vmem [shape: f32[128,1], index: 4, kind: input, shape index: {}]   ;;  %s1237_s5 = inlined_call_operand.vmem [shape: f32[128,1], index: 5, kind: input, shape index: {}]   ;;  %s1238_s6 = inlined_call_operand.<no memory space> [shape: f32[1,1], index: 6, kind: input, shape index: {}]   ;;  %s1239_s3 = inlined_call_operand.vmem [shape: f32[128,128], index: 3, kind: input, shape index: {}]   ;;  %s1240_s7 = inlined_call_operand.vmem [shape: f32[1,128], index: 7, kind: output, shape index: {}]  }
   0x1   :  { %777 = vset.pattern.permute.xlu2 %v788_v0  ;;  %776 = vset.pattern.permute.xlu1 %v788_v0  ;;  %v835_v1 = vld [vmem:[%s1233_s1 + $0x20] sm:$0xff]  ;;  %v840_v2 = vld [vmem:[%s1233_s1 + $0x10] sm:$0xff]  ;;  %v854_v4 = vld [vmem:[%s1233_s1 + $0x28] sm:$0xff] }
   0x2   :  { %v845_v3 = vld [vmem:[%s1233_s1] sm:$0xff]  ;;  %775 = vset.pattern.permute.xlu0 %v788_v0  ;;  %83 = vperm.xlu2 %777, %v835_v1   ;;  %v859_v5 = vld [vmem:[%s1233_s1 + $0x18] sm:$0xff]  ;;  %v864_v6 = vld [vmem:[%s1233_s1 + $0x8] sm:$0xff] }
   0x3   :  { %73 = vperm.xlu1 %776, %v840_v2   ;;  %63 = vperm.xlu0 %775, %v845_v3   ;;  %v872_v7 = vld [vmem:[%s1233_s1 + $0x40] sm:$0xff]  ;;  %v877_v8 = vld [vmem:[%s1233_s1 + $0x38] sm:$0xff]  ;;  %v882_v9 = vld [vmem:[%s1233_s1 + $0x30] sm:$0xff] }
   0x4   :  { %v40_v10 = vld [vmem:[%s1233_s1 + $0x58] sm:$0xff]  ;;  %v39_v11 = vld [vmem:[%s1233_s1 + $0x50] sm:$0xff]  ;;  %v38_v12 = vld [vmem:[%s1233_s1 + $0x48] sm:$0xff] }
   0x5   :  { %v43_v13 = vld [vmem:[%s1233_s1 + $0x70] sm:$0xff]  ;;  %v42_v14 = vld [vmem:[%s1233_s1 + $0x68] sm:$0xff]  ;;  %v41_v15 = vld [vmem:[%s1233_s1 + $0x60] sm:$0xff] }
   0x6   :  { %v46_v16 = vld [vmem:[%s1234_s2 + $0x8] sm:$0xff]  ;;  %v45_v17 = vld [vmem:[%s1234_s2] sm:$0xff]  ;;  %v44_v18 = vld [vmem:[%s1233_s1 + $0x78] sm:$0xff] }
   0x7   :  { %v49_v19 = vld [vmem:[%s1234_s2 + $0x20] sm:$0xff]  ;;  %v48_v20 = vld [vmem:[%s1234_s2 + $0x18] sm:$0xff]  ;;  %v47_v21 = vld [vmem:[%s1234_s2 + $0x10] sm:$0xff] }
   0x8   :  { %v52_v22 = vld [vmem:[%s1234_s2 + $0x38] sm:$0xff]  ;;  %v51_v23 = vld [vmem:[%s1234_s2 + $0x30] sm:$0xff]  ;;  %v50_v24 = vld [vmem:[%s1234_s2 + $0x28] sm:$0xff] }
   0x9   :  { %v55_v25 = vld [vmem:[%s1234_s2 + $0x50] sm:$0xff]  ;;  %v54_v26 = vld [vmem:[%s1234_s2 + $0x48] sm:$0xff]  ;;  %v53_v27 = vld [vmem:[%s1234_s2 + $0x40] sm:$0xff] }
   0xa   :  { %88 = vperm.xlu2 %777, %v854_v4   ;;  %v58_v28 = vld [vmem:[%s1234_s2 + $0x68] sm:$0xff]  ;;  %v57_v29 = vld [vmem:[%s1234_s2 + $0x60] sm:$0xff]  ;;  %v56_v30 = vld [vmem:[%s1234_s2 + $0x58] sm:$0xff] }
   0xb   :  { %78 = vperm.xlu1 %776, %v859_v5   ;;  %68 = vperm.xlu0 %775, %v864_v6   ;;  %v60_v31 = vld [vmem:[%s1234_s2 + $0x78] sm:$0xff]  ;;  %v59_v32 = vld [vmem:[%s1234_s2 + $0x70] sm:$0xff]  ;;  %v976_v43 = vld [vmem:[%s1235_s0] sm:$0x3] }
   0xc   :  { %v979_v44 = vperm.slane %v976_v43, 0  ;;  %v383_v45 = vld [vmem:[%s1236_s4] sm:$0xff]  ;;  %v385_v51 = vld [vmem:[%s1236_s4 + $0x10] sm:$0xff]  ;;  %v386_v52 = vld [vmem:[%s1236_s4 + $0x18] sm:$0xff] }
   0xd   :  { %v384_v58 = vld [vmem:[%s1236_s4 + $0x8] sm:$0xff]  ;;  %v390_v59 = vld [vmem:[%s1236_s4 + $0x38] sm:$0xff]  ;;  %v387_v63 = vld [vmem:[%s1236_s4 + $0x20] sm:$0xff] }
   0xe   :  { %v388_v60 = vld [vmem:[%s1236_s4 + $0x28] sm:$0xff] }
  0x12   :  { %103 = vperm.xlu2 %777, %v872_v7  }
  0x13   :  { %98 = vperm.xlu1 %776, %v877_v8   ;;  %93 = vperm.xlu0 %775, %v882_v9  }
  0x1a   :  { %118 = vperm.xlu2 %777, %v40_v10  }
  0x1b   :  { %113 = vperm.xlu1 %776, %v39_v11   ;;  %108 = vperm.xlu0 %775, %v38_v12  }
  0x22   :  { %133 = vperm.xlu2 %777, %v43_v13  }
  0x23   :  { %128 = vperm.xlu1 %776, %v42_v14   ;;  %123 = vperm.xlu0 %775, %v41_v15  }
  0x2a   :  { %165 = vperm.xlu2 %777, %v46_v16  }
  0x2b   :  { %160 = vperm.xlu1 %776, %v45_v17   ;;  %138 = vperm.xlu0 %775, %v44_v18   ;;  %v392_v17 = vld [vmem:[%s1236_s4 + $0x48] sm:$0xff] }
  0x32   :  { %180 = vperm.xlu2 %777, %v49_v19   ;;  %v560_v19 = vld [vmem:[%s1237_s5] sm:$0xff] }
  0x33   :  { %175 = vperm.xlu1 %776, %v48_v20   ;;  %170 = vperm.xlu0 %775, %v47_v21  }
  0x3a   :  { %195 = vperm.xlu2 %777, %v52_v22  }
  0x3b   :  { %190 = vperm.xlu1 %776, %v51_v23   ;;  %185 = vperm.xlu0 %775, %v50_v24   ;;  %v395_v23 = vld [vmem:[%s1236_s4 + $0x60] sm:$0xff]  ;;  %v565_v24 = vld [vmem:[%s1237_s5 + $0x28] sm:$0xff] }
  0x42   :  { %210 = vperm.xlu2 %777, %v55_v25   ;;  %v563_v25 = vld [vmem:[%s1237_s5 + $0x18] sm:$0xff] }
  0x43   :  { %205 = vperm.xlu1 %776, %v54_v26   ;;  %200 = vperm.xlu0 %775, %v53_v27  }
  0x4a   :  { %225 = vperm.xlu2 %777, %v58_v28  }
  0x4b   :  { %220 = vperm.xlu1 %776, %v57_v29   ;;  %215 = vperm.xlu0 %775, %v56_v30   ;;  %v561_v29 = vld [vmem:[%s1237_s5 + $0x8] sm:$0xff]  ;;  %v566_v30 = vld [vmem:[%s1237_s5 + $0x30] sm:$0xff] }
  0x52   :  { %778 = vset.pattern.permute.xlu2 %v789_v33 }
  0x53   :  { %235 = vperm.xlu1 %776, %v60_v31   ;;  %230 = vperm.xlu0 %775, %v59_v32   ;;  %v568_v31 = vld [vmem:[%s1237_s5 + $0x40] sm:$0xff] }
  0x54   :  { %315 = vperm.xlu2 %778, %v44_v18   ;;  %v562_v18 = vld [vmem:[%s1237_s5 + $0x10] sm:$0xff] }
  0x5b   :  { %780 = vset.pattern.permute.xlu1 %v789_v33  ;;  %779 = vset.pattern.permute.xlu0 %v789_v33 }
  0x5c   :  { %303 = vperm.xlu2 %778, %v41_v15   ;;  %307 = vperm.xlu1 %780, %v42_v14   ;;  %v84_v34 = vpop.permute.xlu2 %83 }
  0x5d   :  { %311 = vperm.xlu0 %779, %v43_v13   ;;  %v146_v53 = vmul.f32 %v979_v44, %v84_v34  ;;  %v12_v34 = vstv %s1238_s6 }
  0x5e   :  { %13 = vst [vmem:[#allocation2] sm:$0x1] %v12_v34 }
  0x64   :  { %295 = vperm.xlu2 %778, %v39_v11   ;;  %299 = vperm.xlu1 %780, %v40_v10   ;;  %v956_v35 = vpop.permute.xlu2 %88 }
  0x65   :  { %291 = vperm.xlu0 %779, %v38_v12  }
  0x6c   :  { %283 = vperm.xlu2 %778, %v877_v8   ;;  %287 = vperm.xlu1 %780, %v872_v7   ;;  %v960_v36 = vpop.permute.xlu2 %103  ;;  %v389_v7 = vld [vmem:[%s1236_s4 + $0x30] sm:$0xff]  ;;  %v396_v8 = vld [vmem:[%s1236_s4 + $0x68] sm:$0xff] }
  0x6d   :  { %279 = vperm.xlu0 %779, %v882_v9   ;;  %v394_v9 = vld [vmem:[%s1236_s4 + $0x58] sm:$0xff] }
  0x74   :  { %271 = vperm.xlu2 %778, %v835_v1   ;;  %275 = vperm.xlu1 %780, %v854_v4   ;;  %v965_v37 = vpop.permute.xlu2 %118 }
  0x75   :  { %267 = vperm.xlu0 %779, %v859_v5   ;;  %v74_v38 = vpop.permute.xlu1 %73  ;;  %v64_v39 = vpop.permute.xlu0 %63 }
  0x76   :  { %v144_v10 = vmul.f32 %v979_v44, %v74_v38  ;;  %v564_v38 = vld [vmem:[%s1237_s5 + $0x20] sm:$0xff] }
  0x7c   :  { %263 = vperm.xlu1 %780, %v840_v2   ;;  %259 = vperm.xlu2 %778, %v864_v6   ;;  %v970_v40 = vpop.permute.xlu2 %133  ;;  %v391_v2 = vld [vmem:[%s1236_s4 + $0x40] sm:$0xff] }
  0x7d   :  { %255 = vperm.xlu0 %779, %v845_v3   ;;  %v79_v41 = vpop.permute.xlu1 %78  ;;  %v69_v42 = vpop.permute.xlu0 %68  ;;  %v142_v3 = vmul.f32 %v979_v44, %v64_v39  ;;  %v1093_v39 = vperm.slane %v976_v43, 1 }
  0x7e   :  { %v143_v46 = vmul.f32 %v979_v44, %v69_v42  ;;  %v145_v11 = vmul.f32 %v979_v44, %v79_v41  ;;  %v569_v42 = vld [vmem:[%s1237_s5 + $0x48] sm:$0xff] }
  0x84   :  { %v166_v47 = vpop.permute.xlu2 %165  ;;  %781 = vset.pattern.permute.xlu1 %v788_v0  ;;  %782 = vset.pattern.permute.xlu2 %v788_v0 }
  0x85   :  { %v987_v48 = vadd.f32 %v166_v47, %v143_v46  ;;  %v989_v49 = vpop.permute.xlu1 %98  ;;  %v991_v50 = vpop.permute.xlu0 %93  ;;  %401 = vperm.xlu1 %781, %v383_v45   ;;  %783 = vset.pattern.permute.xlu0 %v788_v0  ;;  %v393_v0 = vld [vmem:[%s1236_s4 + $0x50] sm:$0xff]  ;;  %v571_v45 = vld [vmem:[%s1237_s5 + $0x58] sm:$0xff] }
  0x86   :  { %411 = vperm.xlu0 %783, %v385_v51   ;;  %406 = vperm.xlu2 %782, %v384_v58  }
  0x8c   :  { %v181_v54 = vpop.permute.xlu2 %180 }
  0x8d   :  { %v1001_v55 = vadd.f32 %v181_v54, %v146_v53  ;;  %v1003_v56 = vpop.permute.xlu1 %113  ;;  %v1005_v57 = vpop.permute.xlu0 %108  ;;  %416 = vperm.xlu1 %781, %v386_v52   ;;  %v567_v54 = vld [vmem:[%s1237_s5 + $0x38] sm:$0xff] }
  0x8e   :  { %436 = vperm.xlu0 %783, %v390_v59   ;;  %421 = vperm.xlu2 %782, %v387_v63   ;;  %v398_v59 = vld [vmem:[%s1236_s4 + $0x78] sm:$0xff] }
  0x94   :  { %v1026_v1 = vpop.permute.xlu2 %195 }
  0x95   :  { %v1016_v61 = vpop.permute.xlu1 %128  ;;  %v1018_v62 = vpop.permute.xlu0 %123  ;;  %426 = vperm.xlu1 %781, %v388_v60   ;;  %v397_v60 = vld [vmem:[%s1236_s4 + $0x70] sm:$0xff] }
  0x96   :  { %451 = vperm.xlu0 %783, %v393_v0   ;;  %431 = vperm.xlu2 %782, %v389_v7   ;;  %v155_v0 = vmul.f32 %v979_v44, %v1016_v61 }
  0x9c   :  { %v1045_v12 = vpop.permute.xlu2 %210 }
  0x9d   :  { %v161_v4 = vpop.permute.xlu1 %160  ;;  %v139_v5 = vpop.permute.xlu0 %138  ;;  %441 = vperm.xlu1 %781, %v391_v2   ;;  %v156_v2 = vmul.f32 %v979_v44, %v970_v40 }
  0x9e   :  { %v1032_v6 = vadd.f32 %v161_v4, %v142_v3  ;;  %466 = vperm.xlu0 %783, %v396_v8   ;;  %446 = vperm.xlu2 %782, %v392_v17   ;;  %v157_v46 = vmul.f32 %v979_v44, %v139_v5  ;;  %v154_v3 = vmul.f32 %v979_v44, %v1018_v62  ;;  %v575_v62 = vld [vmem:[%s1237_s5 + $0x78] sm:$0xff] }
  0xa4   :  { %v226_v22 = vpop.permute.xlu2 %225 }
  0xa5   :  { %v176_v13 = vpop.permute.xlu1 %175  ;;  %v171_v14 = vpop.permute.xlu0 %170  ;;  %456 = vperm.xlu1 %781, %v394_v9   ;;  %v251_v5 = vadd.f32 %v226_v22, %v155_v0  ;;  %v152_v22 = vmul.f32 %v979_v44, %v1003_v56 }
  0xa6   :  { %v1047_v15 = vadd.f32 %v176_v13, %v145_v11  ;;  %v1049_v16 = vadd.f32 %v171_v14, %v144_v10  ;;  %588 = vperm.xlu0 %783, %v562_v18   ;;  %461 = vperm.xlu2 %782, %v395_v23   ;;  %v570_v13 = vld [vmem:[%s1237_s5 + $0x50] sm:$0xff] }
  0xad   :  { %v1060_v20 = vpop.permute.xlu1 %190  ;;  %v1062_v21 = vpop.permute.xlu0 %185  ;;  %578 = vperm.xlu1 %781, %v560_v19   ;;  %v153_v19 = vmul.f32 %v979_v44, %v965_v37 }
  0xae   :  { %603 = vperm.xlu0 %783, %v565_v24   ;;  %v316_v28 = vpop.permute.xlu2 %315  ;;  %583 = vperm.xlu2 %782, %v561_v29   ;;  %v151_v24 = vmul.f32 %v979_v44, %v1005_v57 }
  0xaf   :  { %v334_v47 = vmul.f32 %v1093_v39, %v316_v28 }
  0xb5   :  { %v1073_v26 = vpop.permute.xlu1 %205  ;;  %v1075_v27 = vpop.permute.xlu0 %200  ;;  %593 = vperm.xlu1 %781, %v563_v25  }
  0xb6   :  { %618 = vperm.xlu0 %783, %v568_v31   ;;  %598 = vperm.xlu2 %782, %v564_v38   ;;  %v304_v41 = vpop.permute.xlu2 %303  ;;  %v247_v57 = vadd.f32 %v1073_v26, %v151_v24  ;;  %v150_v26 = vmul.f32 %v979_v44, %v960_v36 }
  0xb7   :  { %v331_v9 = vmul.f32 %v1093_v39, %v304_v41 }
  0xbd   :  { %v221_v32 = vpop.permute.xlu1 %220  ;;  %v216_v33 = vpop.permute.xlu0 %215  ;;  %608 = vperm.xlu1 %781, %v566_v30   ;;  %v248_v30 = vadd.f32 %v1045_v12, %v152_v22  ;;  %v573_v12 = vld [vmem:[%s1237_s5 + $0x68] sm:$0xff] }
  0xbe   :  { %633 = vperm.xlu0 %783, %v571_v45   ;;  %613 = vperm.xlu2 %782, %v567_v54   ;;  %v296_v63 = vpop.permute.xlu2 %295  ;;  %v250_v10 = vadd.f32 %v221_v32, %v154_v3  ;;  %v249_v31 = vadd.f32 %v216_v33, %v153_v19  ;;  %v572_v33 = vld [vmem:[%s1237_s5 + $0x60] sm:$0xff]  ;;  %v246_v54 = vadd.f32 %v1075_v27, %v150_v26  ;;  %v574_v27 = vld [vmem:[%s1237_s5 + $0x70] sm:$0xff] }
  0xbf   :  { %v329_v23 = vmul.f32 %v1093_v39, %v296_v63 }
  0xc0   :  { %v347_v17 = vadd.f32 %v331_v9, %v250_v10 }
  0xc1   :  { %v345_v38 = vadd.f32 %v329_v23, %v248_v30  ;;  %v368_v30 = vld [vmem:[%s1239_s3 + $0x8] sm:$0xff] }
  0xc2   :  { %v363_v34 = vmax.f32 %v347_v17, 0.0 }
  0xc5   :  { %v236_v51 = vpop.permute.xlu1 %235  ;;  %v231_v52 = vpop.permute.xlu0 %230  ;;  %623 = vperm.xlu1 %781, %v569_v42  }
  0xc6   :  { %v253_v53 = vadd.f32 %v236_v51, %v157_v46  ;;  %476 = vperm.xlu0 %783, %v398_v59   ;;  %v252_v11 = vadd.f32 %v231_v52, %v156_v2  ;;  %628 = vperm.xlu2 %782, %v570_v13   ;;  %v284_v25 = vpop.permute.xlu2 %283  ;;  %v149_v46 = vmul.f32 %v979_v44, %v989_v49 }
  0xc7   :  { %v326_v51 = vmul.f32 %v1093_v39, %v284_v25  ;;  %v148_v52 = vmul.f32 %v979_v44, %v991_v50 }
  0xc8   :  { %v350_v43 = vadd.f32 %v334_v47, %v253_v53  ;;  %v361_v47 = vmax.f32 %v345_v38, 0.0  ;;  %v381_v38 = vld [vmem:[%s1239_s3 + $0x70] sm:$0xff] }
  0xc9   :  { %v244_v50 = vadd.f32 %v1060_v20, %v148_v52 }
  0xca   :  { %v366_v58 = vmax.f32 %v350_v43, 0.0  ;;  %v245_v43 = vadd.f32 %v1026_v1, %v149_v46  ;;  %v693_v1 = vld [vmem:[#allocation2] sm:$0x1] }
  0xcc   :  { %479 = vmatpush.msra.mxu0 %v366_v58  ;;  %725 = vmatpush.msra.mxu1 %v366_v58  ;;  %v342_v63 = vadd.f32 %v326_v51, %v245_v43 }
  0xcd   :  { %726 = vmatpush.msra.mxu2 %v366_v58  ;;  %727 = vmatpush.msra.mxu3 %v366_v58 }
  0xce   :  { %v308_v4 = vpop.permute.xlu1 %307  ;;  %471 = vperm.xlu1 %781, %v397_v60   ;;  %653 = vperm.xlu0 %783, %v575_v62   ;;  %v272_v49 = vpop.permute.xlu2 %271 }
  0xcf   :  { %v332_v7 = vmul.f32 %v1093_v39, %v308_v4  ;;  %v312_v8 = vpop.permute.xlu0 %311  ;;  %638 = vperm.xlu2 %782, %v572_v33   ;;  %v147_v4 = vmul.f32 %v979_v44, %v956_v35  ;;  %v323_v20 = vmul.f32 %v1093_v39, %v272_v49  ;;  %v378_v33 = vld [vmem:[%s1239_s3 + $0x58] sm:$0xff] }
  0xd0   :  { %v333_v61 = vmul.f32 %v1093_v39, %v312_v8 }
  0xd1   :  { %v348_v40 = vadd.f32 %v332_v7, %v251_v5  ;;  %v358_v5 = vmax.f32 %v342_v63, 0.0  ;;  %v243_v8 = vadd.f32 %v1062_v21, %v147_v4  ;;  %v339_v35 = vadd.f32 %v323_v20, %v1001_v55 }
  0xd2   :  { %v349_v14 = vadd.f32 %v333_v61, %v252_v11 }
  0xd3   :  { %v364_v28 = vmax.f32 %v348_v40, 0.0 }
  0xd4   :  { %v365_v18 = vmax.f32 %v349_v14, 0.0  ;;  %v355_v14 = vmax.f32 %v339_v35, 0.0 }
  0xd6   :  { %480 = vmatpush.msra.mxu0 %v365_v18  ;;  %728 = vmatpush.msra.mxu1 %v365_v18  ;;  %v300_v29 = vpop.permute.xlu1 %299  ;;  %v260_v13 = vpop.permute.xlu2 %259 }
  0xd7   :  { %729 = vmatpush.msra.mxu2 %v365_v18  ;;  %730 = vmatpush.msra.mxu3 %v365_v18  ;;  %v330_v37 = vmul.f32 %v1093_v39, %v300_v29  ;;  %v292_v32 = vpop.permute.xlu0 %291  ;;  %v320_v62 = vmul.f32 %v1093_v39, %v260_v13 }
  0xd8   :  { %v328_v56 = vmul.f32 %v1093_v39, %v292_v32  ;;  %481 = vmatpush.msra.mxu0 %v364_v28  ;;  %731 = vmatpush.msra.mxu1 %v364_v28  ;;  %v380_v32 = vld [vmem:[%s1239_s3 + $0x68] sm:$0xff] }
  0xd9   :  { %v346_v41 = vadd.f32 %v330_v37, %v249_v31  ;;  %732 = vmatpush.msra.mxu2 %v364_v28  ;;  %733 = vmatpush.msra.mxu3 %v364_v28  ;;  %v372_v31 = vld [vmem:[%s1239_s3 + $0x28] sm:$0xff] }
  0xda   :  { %482 = vmatpush.msra.mxu0 %v363_v34  ;;  %734 = vmatpush.msra.mxu1 %v363_v34  ;;  %v344_v45 = vadd.f32 %v328_v56, %v247_v57  ;;  %v376_v37 = vld [vmem:[%s1239_s3 + $0x48] sm:$0xff]  ;;  %v373_v56 = vld [vmem:[%s1239_s3 + $0x30] sm:$0xff] }
  0xdb   :  { %v362_v42 = vmax.f32 %v346_v41, 0.0  ;;  %735 = vmatpush.msra.mxu2 %v363_v34  ;;  %736 = vmatpush.msra.mxu3 %v363_v34  ;;  %v369_v34 = vld [vmem:[%s1239_s3 + $0x10] sm:$0xff]  ;;  %v370_v41 = vld [vmem:[%s1239_s3 + $0x18] sm:$0xff] }
  0xdc   :  { %643 = vperm.xlu1 %781, %v573_v12   ;;  %v360_v58 = vmax.f32 %v344_v45, 0.0  ;;  %648 = vperm.xlu2 %782, %v574_v27   ;;  %v377_v57 = vld [vmem:[%s1239_s3 + $0x50] sm:$0xff]  ;;  %v374_v12 = vld [vmem:[%s1239_s3 + $0x38] sm:$0xff] }
  0xdd   :  { %483 = vmatpush.msra.mxu0 %v362_v42  ;;  %737 = vmatpush.msra.mxu1 %v362_v42 }
  0xde   :  { %738 = vmatpush.msra.mxu2 %v362_v42  ;;  %739 = vmatpush.msra.mxu3 %v362_v42  ;;  %v288_v53 = vpop.permute.xlu1 %287  ;;  %v382_v42 = vld [vmem:[%s1239_s3 + $0x78] sm:$0xff] }
  0xdf   :  { %v327_v36 = vmul.f32 %v1093_v39, %v288_v53  ;;  %v280_v59 = vpop.permute.xlu0 %279  ;;  %484 = vmatpush.msra.mxu0 %v361_v47  ;;  %740 = vmatpush.msra.mxu1 %v361_v47 }
  0xe0   :  { %v325_v60 = vmul.f32 %v1093_v39, %v280_v59  ;;  %741 = vmatpush.msra.mxu2 %v361_v47  ;;  %742 = vmatpush.msra.mxu3 %v361_v47  ;;  %v407_v26 = vpop.permute.xlu2 %406 }
  0xe1   :  { %v343_v0 = vadd.f32 %v327_v36, %v246_v54  ;;  %485 = vmatpush.msra.mxu0 %v360_v58  ;;  %743 = vmatpush.msra.mxu1 %v360_v58 }
  0xe2   :  { %744 = vmatpush.msra.mxu2 %v360_v58  ;;  %745 = vmatpush.msra.mxu3 %v360_v58  ;;  %v341_v3 = vadd.f32 %v325_v60, %v244_v50 }
  0xe3   :  { %v359_v2 = vmax.f32 %v343_v0, 0.0 }
  0xe4   :  { %696 = vperm.xlu1 %781, %v693_v1   ;;  %v357_v9 = vmax.f32 %v341_v3, 0.0 }
  0xe5   :  { %486 = vmatpush.msra.mxu0 %v359_v2  ;;  %746 = vmatpush.msra.mxu1 %v359_v2 }
  0xe6   :  { %747 = vmatpush.msra.mxu2 %v359_v2  ;;  %748 = vmatpush.msra.mxu3 %v359_v2  ;;  %v276_v7 = vpop.permute.xlu1 %275 }
  0xe7   :  { %v324_v10 = vmul.f32 %v1093_v39, %v276_v7  ;;  %v268_v11 = vpop.permute.xlu0 %267  ;;  %487 = vmatpush.msra.mxu0 %v358_v5  ;;  %749 = vmatpush.msra.mxu1 %v358_v5 }
  0xe8   :  { %v322_v61 = vmul.f32 %v1093_v39, %v268_v11  ;;  %750 = vmatpush.msra.mxu2 %v358_v5  ;;  %751 = vmatpush.msra.mxu3 %v358_v5  ;;  %v422_v47 = vpop.permute.xlu2 %421 }
  0xe9   :  { %v340_v44 = vadd.f32 %v324_v10, %v243_v8  ;;  %488 = vmatpush.msra.mxu0 %v357_v9  ;;  %752 = vmatpush.msra.mxu1 %v357_v9 }
  0xea   :  { %753 = vmatpush.msra.mxu2 %v357_v9  ;;  %754 = vmatpush.msra.mxu3 %v357_v9  ;;  %v338_v21 = vadd.f32 %v322_v61, %v1047_v15  ;;  %v336_v15 = vadd.f32 %v320_v62, %v987_v48  ;;  %v367_v48 = vld [vmem:[%s1239_s3] sm:$0xff] }
  0xeb   :  { %v356_v40 = vmax.f32 %v340_v44, 0.0 }
  0xec   :  { %v354_v18 = vmax.f32 %v338_v21, 0.0  ;;  %v352_v28 = vmax.f32 %v336_v15, 0.0 }
  0xed   :  { %489 = vmatpush.msra.mxu0 %v356_v40  ;;  %755 = vmatpush.msra.mxu1 %v356_v40 }
  0xee   :  { %756 = vmatpush.msra.mxu2 %v356_v40  ;;  %757 = vmatpush.msra.mxu3 %v356_v40  ;;  %v264_v17 = vpop.permute.xlu1 %263 }
  0xef   :  { %v321_v55 = vmul.f32 %v1093_v39, %v264_v17  ;;  %v256_v19 = vpop.permute.xlu0 %255  ;;  %490 = vmatpush.msra.mxu0 %v355_v14  ;;  %758 = vmatpush.msra.mxu1 %v355_v14 }
  0xf0   :  { %v319_v22 = vmul.f32 %v1093_v39, %v256_v19  ;;  %759 = vmatpush.msra.mxu2 %v355_v14  ;;  %760 = vmatpush.msra.mxu3 %v355_v14  ;;  %v379_v39 = vld [vmem:[%s1239_s3 + $0x60] sm:$0xff]  ;;  %v432_v53 = vpop.permute.xlu2 %431 }
  0xf1   :  { %v337_v23 = vadd.f32 %v321_v55, %v1049_v16  ;;  %491 = vmatpush.msra.mxu0 %v354_v18  ;;  %761 = vmatpush.msra.mxu1 %v354_v18  ;;  %v371_v16 = vld [vmem:[%s1239_s3 + $0x20] sm:$0xff] }
  0xf2   :  { %762 = vmatpush.msra.mxu2 %v354_v18  ;;  %763 = vmatpush.msra.mxu3 %v354_v18  ;;  %v335_v25 = vadd.f32 %v319_v22, %v1032_v6  ;;  %v375_v6 = vld [vmem:[%s1239_s3 + $0x40] sm:$0xff] }
  0xf3   :  { %v353_v24 = vmax.f32 %v337_v23, 0.0 }
  0xf4   :  { %v351_v29 = vmax.f32 %v335_v25, 0.0 }
  0xf5   :  { %492 = vmatpush.msra.mxu0 %v353_v24  ;;  %764 = vmatpush.msra.mxu1 %v353_v24 }
  0xf6   :  { %765 = vmatpush.msra.mxu2 %v353_v24  ;;  %766 = vmatpush.msra.mxu3 %v353_v24 }
  0xf7   :  { %493 = vmatpush.msra.mxu0 %v352_v28  ;;  %767 = vmatpush.msra.mxu1 %v352_v28  ;;  %v402_v45 = vpop.permute.xlu1 %401 }
  0xf8   :  { %768 = vmatpush.msra.mxu2 %v352_v28  ;;  %769 = vmatpush.msra.mxu3 %v352_v28  ;;  %v412_v51 = vpop.permute.xlu0 %411  ;;  %v447_v58 = vpop.permute.xlu2 %446 }
  0xf9   :  { %494 = vmatpush.msra.mxu0 %v351_v29  ;;  %770 = vmatpush.msra.mxu1 %v351_v29 }
  0xfa   :  { %771 = vmatpush.msra.mxu2 %v351_v29  ;;  %772 = vmatpush.msra.mxu3 %v351_v29 }
  0xfb   :  { %495 = vmatmul.f32.vlgmr.msra.gmra.mxu0 %v367_v48  ;;  %507 = vmatmul.f32.vlgmr.msra.gmra.mxu1 %v371_v16 }
  0xfc   :  { %519 = vmatmul.f32.vlgmr.msra.gmra.mxu2 %v375_v6  ;;  %531 = vmatmul.f32.vlgmr.msra.gmra.mxu3 %v379_v39 }
  0xff   :  { %v417_v46 = vpop.permute.xlu1 %416 }
 0x100   :  { %v437_v43 = vpop.permute.xlu0 %436  ;;  %v1223_v49 = vpop.permute.xlu2 %461 }
 0x103   :  { %498 = vmatmul.f32.gmra.mxu0 %v368_v30  ;;  %510 = vmatmul.f32.gmra.mxu1 %v372_v31 }
 0x104   :  { %522 = vmatmul.f32.gmra.mxu2 %v376_v37  ;;  %534 = vmatmul.f32.gmra.mxu3 %v380_v32 }
 0x107   :  { %v427_v52 = vpop.permute.xlu1 %426 }
 0x108   :  { %v452_v36 = vpop.permute.xlu0 %451  ;;  %v584_v63 = vpop.permute.xlu2 %583 }
 0x10b   :  { %501 = vmatmul.f32.gmra.mxu0 %v369_v34  ;;  %513 = vmatmul.f32.gmra.mxu1 %v373_v56 }
 0x10c   :  { %525 = vmatmul.f32.gmra.mxu2 %v377_v57  ;;  %537 = vmatmul.f32.gmra.mxu3 %v381_v38 }
 0x10f   :  { %v442_v54 = vpop.permute.xlu1 %441 }
 0x110   :  { %v1225_v60 = vpop.permute.xlu0 %466  ;;  %v599_v20 = vpop.permute.xlu2 %598 }
 0x113   :  { %504 = vmatmul.f32.gmra.mxu0 %v370_v41  ;;  %516 = vmatmul.f32.gmra.mxu1 %v374_v12 }
 0x114   :  { %528 = vmatmul.f32.gmra.mxu2 %v378_v33  ;;  %540 = vmatmul.f32.gmra.mxu3 %v382_v42 }
 0x117   :  { %v1221_v59 = vpop.permute.xlu1 %456 }
 0x118   :  { %v589_v27 = vpop.permute.xlu0 %588  ;;  %v614_v21 = vpop.permute.xlu2 %613 }
 0x11f   :  { %v579_v50 = vpop.permute.xlu1 %578 }
 0x120   :  { %v604_v7 = vpop.permute.xlu0 %603  ;;  %v629_v56 = vpop.permute.xlu2 %628 }
 0x127   :  { %v594_v2 = vpop.permute.xlu1 %593 }
 0x128   :  { %v619_v17 = vpop.permute.xlu0 %618 }
 0x12f   :  { %v609_v13 = vpop.permute.xlu1 %608 }
 0x130   :  { %v634_v33 = vpop.permute.xlu0 %633 }
 0x137   :  { %v624_v30 = vpop.permute.xlu1 %623 }
 0x178   :  { %v496_v0 = vpop.f32.mrf.mxu0  ;;  %v508_v1 = vpop.f32.mrf.mxu1 }
 0x179   :  { %v497_v35 = vadd.f32 %v496_v0, %v402_v45  ;;  %v509_v55 = vadd.f32 %v508_v1, %v422_v47 }
 0x17b   :  { %v544_v14 = vmax.f32 %v497_v35, 0.0  ;;  %v548_v48 = vmax.f32 %v509_v55, 0.0 }
 0x17d   :  { %v656_v23 = vmul.f32 %v579_v50, %v544_v14  ;;  %v660_v57 = vmul.f32 %v599_v20, %v548_v48  ;;  %v639_v20 = vpop.permute.xlu2 %638 }
 0x17f   :  { %v520_v3 = vpop.f32.mrf.mxu2  ;;  %v532_v8 = vpop.f32.mrf.mxu3 }
 0x180   :  { %v499_v4 = vpop.f32.mrf.mxu0  ;;  %v511_v5 = vpop.f32.mrf.mxu1  ;;  %v521_v38 = vadd.f32 %v520_v3, %v442_v54  ;;  %v533_v3 = vadd.f32 %v532_v8, %v1223_v49 }
 0x181   :  { %v500_v9 = vadd.f32 %v499_v4, %v407_v26  ;;  %v512_v24 = vadd.f32 %v511_v5, %v427_v52 }
 0x182   :  { %v552_v52 = vmax.f32 %v521_v38, 0.0 }
 0x183   :  { %v545_v40 = vmax.f32 %v500_v9, 0.0  ;;  %v549_v31 = vmax.f32 %v512_v24, 0.0 }
 0x184   :  { %v664_v54 = vmul.f32 %v619_v17, %v552_v52 }
 0x185   :  { %v657_v19 = vmul.f32 %v584_v63, %v545_v40  ;;  %v661_v45 = vmul.f32 %v604_v7, %v549_v31 }
 0x187   :  { %v523_v10 = vpop.f32.mrf.mxu2  ;;  %v535_v18 = vpop.f32.mrf.mxu3  ;;  %v672_v16 = vadd.f32 %v657_v19, %v656_v23 }
 0x188   :  { %v502_v11 = vpop.f32.mrf.mxu0  ;;  %v514_v61 = vpop.f32.mrf.mxu1  ;;  %v524_v26 = vadd.f32 %v523_v10, %v447_v58  ;;  %v536_v7 = vadd.f32 %v535_v18, %v1225_v60 }
 0x189   :  { %v503_v44 = vadd.f32 %v502_v11, %v412_v51  ;;  %v515_v6 = vadd.f32 %v514_v61, %v432_v53  ;;  %v477_v11 = vpop.permute.xlu0 %476  ;;  %v556_v61 = vmax.f32 %v533_v3, 0.0  ;;  %v649_v60 = vpop.permute.xlu2 %648 }
 0x18a   :  { %v553_v0 = vmax.f32 %v524_v26, 0.0  ;;  %v557_v40 = vmax.f32 %v536_v7, 0.0 }
 0x18b   :  { %v546_v62 = vmax.f32 %v503_v44, 0.0  ;;  %v550_v41 = vmax.f32 %v515_v6, 0.0 }
 0x18c   :  { %v665_v58 = vmul.f32 %v624_v30, %v553_v0 }
 0x18d   :  { %v658_v25 = vmul.f32 %v589_v27, %v546_v62  ;;  %v662_v53 = vmul.f32 %v609_v13, %v550_v41  ;;  %v668_v62 = vmul.f32 %v639_v20, %v556_v61 }
 0x18f   :  { %v526_v22 = vpop.f32.mrf.mxu2  ;;  %v673_v37 = vadd.f32 %v672_v16, %v658_v25  ;;  %v538_v42 = vpop.f32.mrf.mxu3 }
 0x190   :  { %v505_v15 = vpop.f32.mrf.mxu0  ;;  %v517_v29 = vpop.f32.mrf.mxu1  ;;  %v527_v50 = vadd.f32 %v526_v22, %v452_v36 }
 0x191   :  { %v506_v28 = vadd.f32 %v505_v15, %v417_v46  ;;  %v518_v34 = vadd.f32 %v517_v29, %v437_v43  ;;  %v654_v23 = vpop.permute.xlu0 %653 }
 0x192   :  { %v554_v4 = vmax.f32 %v527_v50, 0.0 }
 0x193   :  { %v547_v39 = vmax.f32 %v506_v28, 0.0  ;;  %v551_v47 = vmax.f32 %v518_v34, 0.0 }
 0x194   :  { %v666_v35 = vmul.f32 %v629_v56, %v554_v4 }
 0x195   :  { %v659_v32 = vmul.f32 %v594_v2, %v547_v39  ;;  %v663_v1 = vmul.f32 %v614_v21, %v551_v47  ;;  %v472_v2 = vpop.permute.xlu1 %471 }
 0x196   :  { %v539_v44 = vadd.f32 %v538_v42, %v472_v2 }
 0x197   :  { %v674_v12 = vadd.f32 %v673_v37, %v659_v32  ;;  %v529_v51 = vpop.f32.mrf.mxu2  ;;  %v541_v36 = vpop.f32.mrf.mxu3 }
 0x198   :  { %v530_v43 = vadd.f32 %v529_v51, %v1221_v59  ;;  %v542_v14 = vadd.f32 %v541_v36, %v477_v11  ;;  %v558_v49 = vmax.f32 %v539_v44, 0.0 }
 0x199   :  { %v675_v46 = vadd.f32 %v674_v12, %v660_v57 }
 0x19a   :  { %v555_v10 = vmax.f32 %v530_v43, 0.0  ;;  %v559_v22 = vmax.f32 %v542_v14, 0.0  ;;  %v670_v18 = vmul.f32 %v649_v60, %v558_v49 }
 0x19b   :  { %v676_v63 = vadd.f32 %v675_v46, %v661_v45 }
 0x19c   :  { %v667_v59 = vmul.f32 %v634_v33, %v555_v10  ;;  %v671_v24 = vmul.f32 %v654_v23, %v559_v22 }
 0x19d   :  { %v677_v27 = vadd.f32 %v676_v63, %v662_v53  ;;  %v644_v17 = vpop.permute.xlu1 %643 }
 0x19e   :  { %v669_v55 = vmul.f32 %v644_v17, %v557_v40 }
 0x19f   :  { %v678_v5 = vadd.f32 %v677_v27, %v663_v1 }
 0x1a1   :  { %v679_v9 = vadd.f32 %v678_v5, %v664_v54 }
 0x1a3   :  { %v680_v13 = vadd.f32 %v679_v9, %v665_v58 }
 0x1a5   :  { %v681_v21 = vadd.f32 %v680_v13, %v666_v35  ;;  %v697_v39 = vpop.permute.xlu1 %696 }
 0x1a6   :  { %v699_v31 = vperm.slane %v697_v39, 0 }
 0x1a7   :  { %v682_v8 = vadd.f32 %v681_v21, %v667_v59 }
 0x1a9   :  { %v683_v19 = vadd.f32 %v682_v8, %v668_v62 }
 0x1ab   :  { %v684_v15 = vadd.f32 %v683_v19, %v669_v55 }
 0x1ad   :  { %v685_v25 = vadd.f32 %v684_v15, %v670_v18 }
 0x1af   :  { %v686_v28 = vadd.f32 %v685_v25, %v671_v24 }
 0x1b1   :  { %v687_v29 = vrot.slane %v686_v28, 4 }
 0x1b3   :  { %v688_v48 = vadd.f32 %v687_v29, %v686_v28 }
 0x1b5   :  { %v689_v16 = vrot.slane %v688_v48, 2 }
 0x1b7   :  { %v690_v6 = vadd.f32 %v689_v16, %v688_v48 }
 0x1b9   :  { %v691_v30 = vrot.slane %v690_v6, 1 }
 0x1bb   :  { %v692_v37 = vadd.f32 %v691_v30, %v690_v6 }
 0x1bd   :  { %v700_v32 = vadd.f32 %v699_v31, %v692_v37 }
 0x1bf   :  { %v701_v34 = vsub.f32 0.0, %v700_v32 }
 0x1c1   :  { %v702_v56 = vmul.f32 1.442695, %v701_v34 }
 0x1c3   :  { %784 = vpow2.f32 %v702_v56 }
 0x1c9   :  { %v785_v57 = vpop.eup %784 }
 0x1ca   :  { %v704_v38 = vadd.f32 1.0, %v785_v57 }
 0x1cc   :  { %786 = vrcp.f32 %v704_v38  ;;  %v716_v42 = vand.u32 2147483648, %v704_v38  ;;  %v714_v26 = vand.u32 2147483647, %v704_v38  ;;  %vm710_vm1 = vweird.f32 %v704_v38 }
 0x1ce   :  { %v717_v47 = vor.u32 1.1754944e-38, %v716_v42  ;;  %vm715_vm3 = vcmp.eq.f32.partialorder %v714_v26, 8.507059e+37 }
 0x1d2   :  { %v787_v41 = vpop.eup %786 }
 0x1d3   :  { %v706_v12 = vmul.f32 %v787_v41, %v704_v38  ;;  %vm711_vm0 = vweird.f32 %v787_v41 }
 0x1d4   :  { %vm712_vm2 = vmor %vm710_vm1, %vm711_vm0 }
 0x1d5   :  { %v707_v33 = vsub.f32 1.0, %v706_v12 }
 0x1d7   :  { %v708_v45 = vmul.f32 %v787_v41, %v707_v33 }
 0x1d9   :  { %v709_v46 = vadd.f32 %v787_v41, %v708_v45 }
 0x1db   :  { %v713_v51 = vsel %vm712_vm2, %v787_v41, %v709_v46 }
 0x1dc   :  { %v718_v52 = vsel %vm715_vm3, %v717_v47, %v713_v51 }
 0x1dd   :  { %720 = vst [vmem:[%s1240_s7] sm:$0x1] %v718_v52 }

</bundles_post_ra>
